<compile_context>
chip_gen: v7x
topology: tpu7x:2x2x1
jax: 0.10.0
libtpu: 0.0.40
codegen_flags: <defaults>
</compile_context>

<pallas_src>
import jax
import jax.numpy as jnp
import numpy as np
from jax.experimental import pallas as pl
from jax.experimental.pallas import tpu as pltpu

NBLOCKS = 2
BN_EPS = 1e-5
LANE = 128


def _round_up(n, m):
    return ((n + m - 1) // m) * m


# ----------------------------------------------------------------------------
# Kernel
# ----------------------------------------------------------------------------
def resmlp_kernel(x_ref, win_ref, w1_ref, w2_ref, wout_ref, pp_ref, o_ref):
    HP = win_ref.shape[1]
    OP = wout_ref.shape[1]

    # One lane-dense packed-parameter block: row layout is
    #   [bin, (bn1_g, bn1_b, b1, bn2_g, bn2_b, b2) x NBLOCKS, fbn_g, fbn_b, bout]
    pp = pp_ref[...]

    def bn_relu(h, g_row, b_row):
        # Training-mode BatchNorm1d (batch stats, biased variance) fused w/ ReLU.
        # Direct cross-sublane (XLU) reductions; centered two-pass variance.
        mean = jnp.mean(h, axis=0, keepdims=True)
        c = h - mean
        var = jnp.mean(c * c, axis=0, keepdims=True)
        y = c * jax.lax.rsqrt(var + BN_EPS) * pp[g_row, :HP] + pp[b_row, :HP]
        return jnp.maximum(y, 0.0)

    # In_layer + ReLU  (x is unpadded (B, I); the MXU handles K=16 directly)
    h = jnp.dot(x_ref[...], win_ref[...], preferred_element_type=jnp.float32) + pp[0, :HP]
    h = jnp.maximum(h, 0.0)

    # ResBlocks (static unroll over NBLOCKS)
    for k in range(NBLOCKS):
        base = 1 + 6 * k
        res = h
        t = bn_relu(h, base + 0, base + 1)
        t = jnp.dot(t, w1_ref[k], preferred_element_type=jnp.float32) + pp[base + 2, :HP]
        t = bn_relu(t, base + 3, base + 4)
        t = jnp.dot(t, w2_ref[k], preferred_element_type=jnp.float32) + pp[base + 5, :HP]
        h = t + res

    # Final BN + ReLU + Out_layer (lane-dense padded output -> unmasked vst)
    fbase = 1 + 6 * NBLOCKS
    h = bn_relu(h, fbase + 0, fbase + 1)
    out = jnp.dot(h, wout_ref[...], preferred_element_type=jnp.float32) + pp[fbase + 2, :OP]
    o_ref[...] = out.astype(o_ref.dtype)


# ----------------------------------------------------------------------------
# Parameter packing / padding (done once, offline; the input feature dim is
# NOT padded).  INVARIANT: every padded weight column / bias / gamma / beta
# entry is exactly zero, so padded lanes stay exactly zero through the whole
# network (relu(0)=0, BN of an all-zero column gives beta=0, residual adds of
# zeros stay zero).  Do not change this without re-checking that invariant.
# ----------------------------------------------------------------------------
def pack_params(p):
    I, H = p["win"].shape
    O = p["wout"].shape[1]
    HP, OP = _round_up(H, LANE), _round_up(O, LANE)
    W = max(HP, OP)

    def padw(w, r, c):
        w = np.asarray(w, np.float32)
        return np.pad(w, ((0, r - w.shape[0]), (0, c - w.shape[1])))

    def padrow(v):
        v = np.asarray(v, np.float32).reshape(-1)
        return np.pad(v, (0, W - v.shape[0]))

    rows = [padrow(p["bin"])]
    for k in range(NBLOCKS):
        rows += [padrow(p["bn1_g"][k]), padrow(p["bn1_b"][k]), padrow(p["b1"][k]),
                 padrow(p["bn2_g"][k]), padrow(p["bn2_b"][k]), padrow(p["b2"][k])]
    rows += [padrow(p["fbn_g"]), padrow(p["fbn_b"]), padrow(p["bout"])]
    pp = np.stack(rows)  # [1 + 6*NBLOCKS + 3, W]  -> (16, 128) here

    # Assert the zero-padding invariant described above.
    assert np.all(pp[:, H:HP] == 0.0) and np.all(pp[-1, O:] == 0.0)

    return {
        "win": jnp.asarray(padw(p["win"], I, HP)),              # (I, HP), I unpadded
        "w1": jnp.asarray(np.stack([padw(p["w1"][k], HP, HP) for k in range(NBLOCKS)])),
        "w2": jnp.asarray(np.stack([padw(p["w2"][k], HP, HP) for k in range(NBLOCKS)])),
        "wout": jnp.asarray(padw(p["wout"], HP, OP)),
        "pp": jnp.asarray(pp),
        "dims": (I, H, O, HP, OP),
    }


# ----------------------------------------------------------------------------
# Wrapper.  Returns the lane-dense padded (B, OP) slab; columns >= O are
# exactly zero.  Consumers can slice [:, :O] (or better, consume the slab).
# ----------------------------------------------------------------------------
def resmlp_forward(x, packed):
    I, H, O, HP, OP = packed["dims"]
    B = x.shape[0]
    x = jnp.asarray(x, jnp.float32)

    args = (x, packed["win"], packed["w1"], packed["w2"], packed["wout"], packed["pp"])

    out_bytes = B * OP * 4
    total_bytes = sum(int(np.prod(a.shape)) * a.dtype.itemsize for a in args) + out_bytes
    flops = 2 * B * (I * HP + 2 * NBLOCKS * HP * HP + HP * OP)
    transcendentals = (2 * NBLOCKS + 1) * HP  # rsqrt per feature column per BN

    vmem_spec = pl.BlockSpec(memory_space=pltpu.MemorySpace.VMEM)
    return pl.pallas_call(
        resmlp_kernel,
        out_shape=jax.ShapeDtypeStruct((B, OP), jnp.float32),
        in_specs=[vmem_spec] * len(args),
        out_specs=vmem_spec,
        cost_estimate=pl.CostEstimate(
            flops=flops, transcendentals=transcendentals, bytes_accessed=total_bytes),
    )(*args)


# ----------------------------------------------------------------------------
# Torch-like initialization (unpadded) and pure-JAX reference
# ----------------------------------------------------------------------------
def init_params(key, input_size, hidden_size, output_size, nblocks=NBLOCKS):
    ks = jax.random.split(key, 8)

    def lin(k, fan_in, fan_out):
        bound = 1.0 / np.sqrt(fan_in)
        kw, kb = jax.random.split(k)
        w = jax.random.uniform(kw, (fan_in, fan_out), jnp.float32, -bound, bound)
        b = jax.random.uniform(kb, (1, fan_out), jnp.float32, -bound, bound)
        return w, b

    win, bin_ = lin(ks[0], input_size, hidden_size)
    w1, b1, w2, b2 = [], [], [], []
    for k in range(nblocks):
        wa, ba = lin(jax.random.fold_in(ks[1], k), hidden_size, hidden_size)
        wb, bb = lin(jax.random.fold_in(ks[2], k), hidden_size, hidden_size)
        w1.append(wa); b1.append(ba); w2.append(wb); b2.append(bb)
    wout, bout = lin(ks[3], hidden_size, output_size)

    def bn(k, n, lead=()):
        kg, kb = jax.random.split(k)
        g = 1.0 + 0.1 * jax.random.normal(kg, lead + (1, n), jnp.float32)
        b = 0.1 * jax.random.normal(kb, lead + (1, n), jnp.float32)
        return g, b

    bn1_g, bn1_b = bn(ks[4], hidden_size, (nblocks,))
    bn2_g, bn2_b = bn(ks[5], hidden_size, (nblocks,))
    fbn_g, fbn_b = bn(ks[6], hidden_size)

    return {
        "win": win, "bin": bin_,
        "bn1_g": bn1_g, "bn1_b": bn1_b, "w1": jnp.stack(w1), "b1": jnp.stack(b1),
        "bn2_g": bn2_g, "bn2_b": bn2_b, "w2": jnp.stack(w2), "b2": jnp.stack(b2),
        "fbn_g": fbn_g, "fbn_b": fbn_b,
        "wout": wout, "bout": bout,
    }


def _batchnorm_ref(h, gamma, beta):
    # two-pass training-mode BatchNorm1d (batch stats, biased variance)
    mean = jnp.mean(h, axis=0, keepdims=True)
    var = jnp.mean((h - mean) ** 2, axis=0, keepdims=True)
    return gamma * (h - mean) * jax.lax.rsqrt(var + BN_EPS) + beta


def resmlp_reference(x, p):
    h = jnp.maximum(x @ p["win"] + p["bin"], 0.0)
    for k in range(NBLOCKS):
        r = h
        t = jnp.maximum(_batchnorm_ref(h, p["bn1_g"][k], p["bn1_b"][k]), 0.0)
        t = t @ p["w1"][k] + p["b1"][k]
        t = jnp.maximum(_batchnorm_ref(t, p["bn2_g"][k], p["bn2_b"][k]), 0.0)
        t = t @ p["w2"][k] + p["b2"][k]
        h = t + r
    h = jnp.maximum(_batchnorm_ref(h, p["fbn_g"], p["fbn_b"]), 0.0)
    return h @ p["wout"] + p["bout"]


if __name__ == "__main__":
    B, INPUT, HIDDEN, OUTPUT = 8, 16, 32, 8

    key = jax.random.PRNGKey(0)
    kx, kp = jax.random.split(key)
    x = jax.random.normal(kx, (B, INPUT), jnp.float32)
    params = init_params(kp, INPUT, HIDDEN, OUTPUT)

    packed = pack_params(params)             # pad + pack once; reuse across calls
    out_padded = jax.block_until_ready(resmlp_forward(x, packed))  # (B, 128) slab

    ref = jax.block_until_ready(resmlp_reference(x, params))
    out = np.asarray(out_padded)
    np.testing.assert_allclose(out[:, :OUTPUT], np.asarray(ref), rtol=1e-4, atol=1e-4)
    # padded lanes stay exactly zero (documented invariant)
    assert np.all(out[:, OUTPUT:] == 0.0)

    print("KERNEL_OK")
</pallas_src>

<mosaic_0001>
module attributes {stable_mosaic.version = 11 : i64} {
  func.func @resmlp_kernel(%arg0: memref<8x16xf32, #tpu.memory_space<vmem>>, %arg1: memref<16x128xf32, #tpu.memory_space<vmem>>, %arg2: memref<2x128x128xf32, #tpu.memory_space<vmem>>, %arg3: memref<2x128x128xf32, #tpu.memory_space<vmem>>, %arg4: memref<128x128xf32, #tpu.memory_space<vmem>>, %arg5: memref<16x128xf32, #tpu.memory_space<vmem>>, %arg6: memref<8x128xf32, #tpu.memory_space<vmem>>) attributes {dimension_semantics = [], scalar_prefetch = 0 : i64, scratch_operands = 0 : i64, tpu.core_type = #tpu.core_type<tc>} {
    %c0 = arith.constant 0 : index
    %c0_0 = arith.constant 0 : index
    %0 = vector.load %arg5[%c0, %c0_0] : memref<16x128xf32, #tpu.memory_space<vmem>>, vector<16x128xf32>
    %c0_1 = arith.constant 0 : index
    %c0_2 = arith.constant 0 : index
    %1 = vector.load %arg0[%c0_1, %c0_2] : memref<8x16xf32, #tpu.memory_space<vmem>>, vector<8x16xf32>
    %c0_3 = arith.constant 0 : index
    %c0_4 = arith.constant 0 : index
    %2 = vector.load %arg1[%c0_3, %c0_4] : memref<16x128xf32, #tpu.memory_space<vmem>>, vector<16x128xf32>
    %cst = arith.constant dense<0.000000e+00> : vector<8x128xf32>
    %3 = tpu.matmul %1, %2, %cst {dimension_numbers = #tpu.dot_dimension_numbers<[1], [0], [0], [1], [0, 0, 1, 1], [], []>} : vector<8x16xf32>, vector<16x128xf32>, vector<8x128xf32> -> vector<8x128xf32>
    %4 = vector.extract_strided_slice %0 {offsets = [0, 0], sizes = [1, 128], strides = [1, 1]} : vector<16x128xf32> to vector<1x128xf32>
    %5 = vector.shape_cast %4 : vector<1x128xf32> to vector<128xf32>
    %6 = vector.shape_cast %5 : vector<128xf32> to vector<1x128xf32>
    %7 = vector.broadcast %6 : vector<1x128xf32> to vector<8x128xf32>
    %8 = arith.addf %3, %7 : vector<8x128xf32>
    %cst_5 = arith.constant 0.000000e+00 : f32
    %9 = vector.broadcast %cst_5 : f32 to vector<8x128xf32>
    %10 = arith.maximumf %8, %9 : vector<8x128xf32>
    %cst_6 = arith.constant dense<0.000000e+00> : vector<128xf32>
    %11 = vector.multi_reduction <add>, %10, %cst_6 [0] : vector<8x128xf32> to vector<128xf32>
    %12 = vector.shape_cast %11 : vector<128xf32> to vector<1x128xf32>
    %cst_7 = arith.constant 8.000000e+00 : f32
    %13 = vector.broadcast %cst_7 : f32 to vector<1x128xf32>
    %14 = arith.divf %12, %13 : vector<1x128xf32>
    %15 = vector.broadcast %14 : vector<1x128xf32> to vector<8x128xf32>
    %16 = arith.subf %10, %15 : vector<8x128xf32>
    %17 = arith.mulf %16, %16 : vector<8x128xf32>
    %cst_8 = arith.constant dense<0.000000e+00> : vector<128xf32>
    %18 = vector.multi_reduction <add>, %17, %cst_8 [0] : vector<8x128xf32> to vector<128xf32>
    %19 = vector.shape_cast %18 : vector<128xf32> to vector<1x128xf32>
    %cst_9 = arith.constant 8.000000e+00 : f32
    %20 = vector.broadcast %cst_9 : f32 to vector<1x128xf32>
    %21 = arith.divf %19, %20 : vector<1x128xf32>
    %cst_10 = arith.constant 9.99999974E-6 : f32
    %22 = vector.broadcast %cst_10 : f32 to vector<1x128xf32>
    %23 = arith.addf %21, %22 : vector<1x128xf32>
    %24 = math.rsqrt %23 : vector<1x128xf32>
    %25 = vector.broadcast %24 : vector<1x128xf32> to vector<8x128xf32>
    %26 = arith.mulf %16, %25 : vector<8x128xf32>
    %27 = vector.extract_strided_slice %0 {offsets = [1, 0], sizes = [1, 128], strides = [1, 1]} : vector<16x128xf32> to vector<1x128xf32>
    %28 = vector.shape_cast %27 : vector<1x128xf32> to vector<128xf32>
    %29 = vector.shape_cast %28 : vector<128xf32> to vector<1x128xf32>
    %30 = vector.broadcast %29 : vector<1x128xf32> to vector<8x128xf32>
    %31 = arith.mulf %26, %30 : vector<8x128xf32>
    %32 = vector.extract_strided_slice %0 {offsets = [2, 0], sizes = [1, 128], strides = [1, 1]} : vector<16x128xf32> to vector<1x128xf32>
    %33 = vector.shape_cast %32 : vector<1x128xf32> to vector<128xf32>
    %34 = vector.shape_cast %33 : vector<128xf32> to vector<1x128xf32>
    %35 = vector.broadcast %34 : vector<1x128xf32> to vector<8x128xf32>
    %36 = arith.addf %31, %35 : vector<8x128xf32>
    %cst_11 = arith.constant 0.000000e+00 : f32
    %37 = vector.broadcast %cst_11 : f32 to vector<8x128xf32>
    %38 = arith.maximumf %36, %37 : vector<8x128xf32>
    %c0_12 = arith.constant 0 : index
    %c0_13 = arith.constant 0 : index
    %c0_14 = arith.constant 0 : index
    %39 = vector.load %arg2[%c0_12, %c0_13, %c0_14] : memref<2x128x128xf32, #tpu.memory_space<vmem>>, vector<1x128x128xf32>
    %40 = vector.shape_cast %39 : vector<1x128x128xf32> to vector<128x128xf32>
    %cst_15 = arith.constant dense<0.000000e+00> : vector<8x128xf32>
    %41 = tpu.matmul %38, %40, %cst_15 {dimension_numbers = #tpu.dot_dimension_numbers<[1], [0], [0], [1], [0, 0, 1, 1], [], []>} : vector<8x128xf32>, vector<128x128xf32>, vector<8x128xf32> -> vector<8x128xf32>
    %42 = vector.extract_strided_slice %0 {offsets = [3, 0], sizes = [1, 128], strides = [1, 1]} : vector<16x128xf32> to vector<1x128xf32>
    %43 = vector.shape_cast %42 : vector<1x128xf32> to vector<128xf32>
    %44 = vector.shape_cast %43 : vector<128xf32> to vector<1x128xf32>
    %45 = vector.broadcast %44 : vector<1x128xf32> to vector<8x128xf32>
    %46 = arith.addf %41, %45 : vector<8x128xf32>
    %cst_16 = arith.constant dense<0.000000e+00> : vector<128xf32>
    %47 = vector.multi_reduction <add>, %46, %cst_16 [0] : vector<8x128xf32> to vector<128xf32>
    %48 = vector.shape_cast %47 : vector<128xf32> to vector<1x128xf32>
    %cst_17 = arith.constant 8.000000e+00 : f32
    %49 = vector.broadcast %cst_17 : f32 to vector<1x128xf32>
    %50 = arith.divf %48, %49 : vector<1x128xf32>
    %51 = vector.broadcast %50 : vector<1x128xf32> to vector<8x128xf32>
    %52 = arith.subf %46, %51 : vector<8x128xf32>
    %53 = arith.mulf %52, %52 : vector<8x128xf32>
    %cst_18 = arith.constant dense<0.000000e+00> : vector<128xf32>
    %54 = vector.multi_reduction <add>, %53, %cst_18 [0] : vector<8x128xf32> to vector<128xf32>
    %55 = vector.shape_cast %54 : vector<128xf32> to vector<1x128xf32>
    %cst_19 = arith.constant 8.000000e+00 : f32
    %56 = vector.broadcast %cst_19 : f32 to vector<1x128xf32>
    %57 = arith.divf %55, %56 : vector<1x128xf32>
    %cst_20 = arith.constant 9.99999974E-6 : f32
    %58 = vector.broadcast %cst_20 : f32 to vector<1x128xf32>
    %59 = arith.addf %57, %58 : vector<1x128xf32>
    %60 = math.rsqrt %59 : vector<1x128xf32>
    %61 = vector.broadcast %60 : vector<1x128xf32> to vector<8x128xf32>
    %62 = arith.mulf %52, %61 : vector<8x128xf32>
    %63 = vector.extract_strided_slice %0 {offsets = [4, 0], sizes = [1, 128], strides = [1, 1]} : vector<16x128xf32> to vector<1x128xf32>
    %64 = vector.shape_cast %63 : vector<1x128xf32> to vector<128xf32>
    %65 = vector.shape_cast %64 : vector<128xf32> to vector<1x128xf32>
    %66 = vector.broadcast %65 : vector<1x128xf32> to vector<8x128xf32>
    %67 = arith.mulf %62, %66 : vector<8x128xf32>
    %68 = vector.extract_strided_slice %0 {offsets = [5, 0], sizes = [1, 128], strides = [1, 1]} : vector<16x128xf32> to vector<1x128xf32>
    %69 = vector.shape_cast %68 : vector<1x128xf32> to vector<128xf32>
    %70 = vector.shape_cast %69 : vector<128xf32> to vector<1x128xf32>
    %71 = vector.broadcast %70 : vector<1x128xf32> to vector<8x128xf32>
    %72 = arith.addf %67, %71 : vector<8x128xf32>
    %cst_21 = arith.constant 0.000000e+00 : f32
    %73 = vector.broadcast %cst_21 : f32 to vector<8x128xf32>
    %74 = arith.maximumf %72, %73 : vector<8x128xf32>
    %c0_22 = arith.constant 0 : index
    %c0_23 = arith.constant 0 : index
    %c0_24 = arith.constant 0 : index
    %75 = vector.load %arg3[%c0_22, %c0_23, %c0_24] : memref<2x128x128xf32, #tpu.memory_space<vmem>>, vector<1x128x128xf32>
    %76 = vector.shape_cast %75 : vector<1x128x128xf32> to vector<128x128xf32>
    %cst_25 = arith.constant dense<0.000000e+00> : vector<8x128xf32>
    %77 = tpu.matmul %74, %76, %cst_25 {dimension_numbers = #tpu.dot_dimension_numbers<[1], [0], [0], [1], [0, 0, 1, 1], [], []>} : vector<8x128xf32>, vector<128x128xf32>, vector<8x128xf32> -> vector<8x128xf32>
    %78 = vector.extract_strided_slice %0 {offsets = [6, 0], sizes = [1, 128], strides = [1, 1]} : vector<16x128xf32> to vector<1x128xf32>
    %79 = vector.shape_cast %78 : vector<1x128xf32> to vector<128xf32>
    %80 = vector.shape_cast %79 : vector<128xf32> to vector<1x128xf32>
    %81 = vector.broadcast %80 : vector<1x128xf32> to vector<8x128xf32>
    %82 = arith.addf %77, %81 : vector<8x128xf32>
    %83 = arith.addf %82, %10 : vector<8x128xf32>
    %cst_26 = arith.constant dense<0.000000e+00> : vector<128xf32>
    %84 = vector.multi_reduction <add>, %83, %cst_26 [0] : vector<8x128xf32> to vector<128xf32>
    %85 = vector.shape_cast %84 : vector<128xf32> to vector<1x128xf32>
    %cst_27 = arith.constant 8.000000e+00 : f32
    %86 = vector.broadcast %cst_27 : f32 to vector<1x128xf32>
    %87 = arith.divf %85, %86 : vector<1x128xf32>
    %88 = vector.broadcast %87 : vector<1x128xf32> to vector<8x128xf32>
    %89 = arith.subf %83, %88 : vector<8x128xf32>
    %90 = arith.mulf %89, %89 : vector<8x128xf32>
    %cst_28 = arith.constant dense<0.000000e+00> : vector<128xf32>
    %91 = vector.multi_reduction <add>, %90, %cst_28 [0] : vector<8x128xf32> to vector<128xf32>
    %92 = vector.shape_cast %91 : vector<128xf32> to vector<1x128xf32>
    %cst_29 = arith.constant 8.000000e+00 : f32
    %93 = vector.broadcast %cst_29 : f32 to vector<1x128xf32>
    %94 = arith.divf %92, %93 : vector<1x128xf32>
    %cst_30 = arith.constant 9.99999974E-6 : f32
    %95 = vector.broadcast %cst_30 : f32 to vector<1x128xf32>
    %96 = arith.addf %94, %95 : vector<1x128xf32>
    %97 = math.rsqrt %96 : vector<1x128xf32>
    %98 = vector.broadcast %97 : vector<1x128xf32> to vector<8x128xf32>
    %99 = arith.mulf %89, %98 : vector<8x128xf32>
    %100 = vector.extract_strided_slice %0 {offsets = [7, 0], sizes = [1, 128], strides = [1, 1]} : vector<16x128xf32> to vector<1x128xf32>
    %101 = vector.shape_cast %100 : vector<1x128xf32> to vector<128xf32>
    %102 = vector.shape_cast %101 : vector<128xf32> to vector<1x128xf32>
    %103 = vector.broadcast %102 : vector<1x128xf32> to vector<8x128xf32>
    %104 = arith.mulf %99, %103 : vector<8x128xf32>
    %105 = vector.extract_strided_slice %0 {offsets = [8, 0], sizes = [1, 128], strides = [1, 1]} : vector<16x128xf32> to vector<1x128xf32>
    %106 = vector.shape_cast %105 : vector<1x128xf32> to vector<128xf32>
    %107 = vector.shape_cast %106 : vector<128xf32> to vector<1x128xf32>
    %108 = vector.broadcast %107 : vector<1x128xf32> to vector<8x128xf32>
    %109 = arith.addf %104, %108 : vector<8x128xf32>
    %cst_31 = arith.constant 0.000000e+00 : f32
    %110 = vector.broadcast %cst_31 : f32 to vector<8x128xf32>
    %111 = arith.maximumf %109, %110 : vector<8x128xf32>
    %c1 = arith.constant 1 : index
    %c0_32 = arith.constant 0 : index
    %c0_33 = arith.constant 0 : index
    %112 = vector.load %arg2[%c1, %c0_32, %c0_33] : memref<2x128x128xf32, #tpu.memory_space<vmem>>, vector<1x128x128xf32>
    %113 = vector.shape_cast %112 : vector<1x128x128xf32> to vector<128x128xf32>
    %cst_34 = arith.constant dense<0.000000e+00> : vector<8x128xf32>
    %114 = tpu.matmul %111, %113, %cst_34 {dimension_numbers = #tpu.dot_dimension_numbers<[1], [0], [0], [1], [0, 0, 1, 1], [], []>} : vector<8x128xf32>, vector<128x128xf32>, vector<8x128xf32> -> vector<8x128xf32>
    %115 = vector.extract_strided_slice %0 {offsets = [9, 0], sizes = [1, 128], strides = [1, 1]} : vector<16x128xf32> to vector<1x128xf32>
    %116 = vector.shape_cast %115 : vector<1x128xf32> to vector<128xf32>
    %117 = vector.shape_cast %116 : vector<128xf32> to vector<1x128xf32>
    %118 = vector.broadcast %117 : vector<1x128xf32> to vector<8x128xf32>
    %119 = arith.addf %114, %118 : vector<8x128xf32>
    %cst_35 = arith.constant dense<0.000000e+00> : vector<128xf32>
    %120 = vector.multi_reduction <add>, %119, %cst_35 [0] : vector<8x128xf32> to vector<128xf32>
    %121 = vector.shape_cast %120 : vector<128xf32> to vector<1x128xf32>
    %cst_36 = arith.constant 8.000000e+00 : f32
    %122 = vector.broadcast %cst_36 : f32 to vector<1x128xf32>
    %123 = arith.divf %121, %122 : vector<1x128xf32>
    %124 = vector.broadcast %123 : vector<1x128xf32> to vector<8x128xf32>
    %125 = arith.subf %119, %124 : vector<8x128xf32>
    %126 = arith.mulf %125, %125 : vector<8x128xf32>
    %cst_37 = arith.constant dense<0.000000e+00> : vector<128xf32>
    %127 = vector.multi_reduction <add>, %126, %cst_37 [0] : vector<8x128xf32> to vector<128xf32>
    %128 = vector.shape_cast %127 : vector<128xf32> to vector<1x128xf32>
    %cst_38 = arith.constant 8.000000e+00 : f32
    %129 = vector.broadcast %cst_38 : f32 to vector<1x128xf32>
    %130 = arith.divf %128, %129 : vector<1x128xf32>
    %cst_39 = arith.constant 9.99999974E-6 : f32
    %131 = vector.broadcast %cst_39 : f32 to vector<1x128xf32>
    %132 = arith.addf %130, %131 : vector<1x128xf32>
    %133 = math.rsqrt %132 : vector<1x128xf32>
    %134 = vector.broadcast %133 : vector<1x128xf32> to vector<8x128xf32>
    %135 = arith.mulf %125, %134 : vector<8x128xf32>
    %136 = vector.extract_strided_slice %0 {offsets = [10, 0], sizes = [1, 128], strides = [1, 1]} : vector<16x128xf32> to vector<1x128xf32>
    %137 = vector.shape_cast %136 : vector<1x128xf32> to vector<128xf32>
    %138 = vector.shape_cast %137 : vector<128xf32> to vector<1x128xf32>
    %139 = vector.broadcast %138 : vector<1x128xf32> to vector<8x128xf32>
    %140 = arith.mulf %135, %139 : vector<8x128xf32>
    %141 = vector.extract_strided_slice %0 {offsets = [11, 0], sizes = [1, 128], strides = [1, 1]} : vector<16x128xf32> to vector<1x128xf32>
    %142 = vector.shape_cast %141 : vector<1x128xf32> to vector<128xf32>
    %143 = vector.shape_cast %142 : vector<128xf32> to vector<1x128xf32>
    %144 = vector.broadcast %143 : vector<1x128xf32> to vector<8x128xf32>
    %145 = arith.addf %140, %144 : vector<8x128xf32>
    %cst_40 = arith.constant 0.000000e+00 : f32
    %146 = vector.broadcast %cst_40 : f32 to vector<8x128xf32>
    %147 = arith.maximumf %145, %146 : vector<8x128xf32>
    %c1_41 = arith.constant 1 : index
    %c0_42 = arith.constant 0 : index
    %c0_43 = arith.constant 0 : index
    %148 = vector.load %arg3[%c1_41, %c0_42, %c0_43] : memref<2x128x128xf32, #tpu.memory_space<vmem>>, vector<1x128x128xf32>
    %149 = vector.shape_cast %148 : vector<1x128x128xf32> to vector<128x128xf32>
    %cst_44 = arith.constant dense<0.000000e+00> : vector<8x128xf32>
    %150 = tpu.matmul %147, %149, %cst_44 {dimension_numbers = #tpu.dot_dimension_numbers<[1], [0], [0], [1], [0, 0, 1, 1], [], []>} : vector<8x128xf32>, vector<128x128xf32>, vector<8x128xf32> -> vector<8x128xf32>
    %151 = vector.extract_strided_slice %0 {offsets = [12, 0], sizes = [1, 128], strides = [1, 1]} : vector<16x128xf32> to vector<1x128xf32>
    %152 = vector.shape_cast %151 : vector<1x128xf32> to vector<128xf32>
    %153 = vector.shape_cast %152 : vector<128xf32> to vector<1x128xf32>
    %154 = vector.broadcast %153 : vector<1x128xf32> to vector<8x128xf32>
    %155 = arith.addf %150, %154 : vector<8x128xf32>
    %156 = arith.addf %155, %83 : vector<8x128xf32>
    %cst_45 = arith.constant dense<0.000000e+00> : vector<128xf32>
    %157 = vector.multi_reduction <add>, %156, %cst_45 [0] : vector<8x128xf32> to vector<128xf32>
    %158 = vector.shape_cast %157 : vector<128xf32> to vector<1x128xf32>
    %cst_46 = arith.constant 8.000000e+00 : f32
    %159 = vector.broadcast %cst_46 : f32 to vector<1x128xf32>
    %160 = arith.divf %158, %159 : vector<1x128xf32>
    %161 = vector.broadcast %160 : vector<1x128xf32> to vector<8x128xf32>
    %162 = arith.subf %156, %161 : vector<8x128xf32>
    %163 = arith.mulf %162, %162 : vector<8x128xf32>
    %cst_47 = arith.constant dense<0.000000e+00> : vector<128xf32>
    %164 = vector.multi_reduction <add>, %163, %cst_47 [0] : vector<8x128xf32> to vector<128xf32>
    %165 = vector.shape_cast %164 : vector<128xf32> to vector<1x128xf32>
    %cst_48 = arith.constant 8.000000e+00 : f32
    %166 = vector.broadcast %cst_48 : f32 to vector<1x128xf32>
    %167 = arith.divf %165, %166 : vector<1x128xf32>
    %cst_49 = arith.constant 9.99999974E-6 : f32
    %168 = vector.broadcast %cst_49 : f32 to vector<1x128xf32>
    %169 = arith.addf %167, %168 : vector<1x128xf32>
    %170 = math.rsqrt %169 : vector<1x128xf32>
    %171 = vector.broadcast %170 : vector<1x128xf32> to vector<8x128xf32>
    %172 = arith.mulf %162, %171 : vector<8x128xf32>
    %173 = vector.extract_strided_slice %0 {offsets = [13, 0], sizes = [1, 128], strides = [1, 1]} : vector<16x128xf32> to vector<1x128xf32>
    %174 = vector.shape_cast %173 : vector<1x128xf32> to vector<128xf32>
    %175 = vector.shape_cast %174 : vector<128xf32> to vector<1x128xf32>
    %176 = vector.broadcast %175 : vector<1x128xf32> to vector<8x128xf32>
    %177 = arith.mulf %172, %176 : vector<8x128xf32>
    %178 = vector.extract_strided_slice %0 {offsets = [14, 0], sizes = [1, 128], strides = [1, 1]} : vector<16x128xf32> to vector<1x128xf32>
    %179 = vector.shape_cast %178 : vector<1x128xf32> to vector<128xf32>
    %180 = vector.shape_cast %179 : vector<128xf32> to vector<1x128xf32>
    %181 = vector.broadcast %180 : vector<1x128xf32> to vector<8x128xf32>
    %182 = arith.addf %177, %181 : vector<8x128xf32>
    %cst_50 = arith.constant 0.000000e+00 : f32
    %183 = vector.broadcast %cst_50 : f32 to vector<8x128xf32>
    %184 = arith.maximumf %182, %183 : vector<8x128xf32>
    %c0_51 = arith.constant 0 : index
    %c0_52 = arith.constant 0 : index
    %185 = vector.load %arg4[%c0_51, %c0_52] : memref<128x128xf32, #tpu.memory_space<vmem>>, vector<128x128xf32>
    %cst_53 = arith.constant dense<0.000000e+00> : vector<8x128xf32>
    %186 = tpu.matmul %184, %185, %cst_53 {dimension_numbers = #tpu.dot_dimension_numbers<[1], [0], [0], [1], [0, 0, 1, 1], [], []>} : vector<8x128xf32>, vector<128x128xf32>, vector<8x128xf32> -> vector<8x128xf32>
    %187 = vector.extract_strided_slice %0 {offsets = [15, 0], sizes = [1, 128], strides = [1, 1]} : vector<16x128xf32> to vector<1x128xf32>
    %188 = vector.shape_cast %187 : vector<1x128xf32> to vector<128xf32>
    %189 = vector.shape_cast %188 : vector<128xf32> to vector<1x128xf32>
    %190 = vector.broadcast %189 : vector<1x128xf32> to vector<8x128xf32>
    %191 = arith.addf %186, %190 : vector<8x128xf32>
    %c0_54 = arith.constant 0 : index
    %c0_55 = arith.constant 0 : index
    %192 = vector.load %arg6[%c0_54, %c0_55] : memref<8x128xf32, #tpu.memory_space<vmem>>, vector<8x128xf32>
    tpu.vector_store %arg6[%c0_54, %c0_55], %191 {strides = array<i32>} : memref<8x128xf32, #tpu.memory_space<vmem>>, vector<8x128xf32>,
    return
  }
}

</mosaic_0001>

<bundles_post_ra>
// kernel: tpu_custom_call.1
= control target key start
LH: loop header
LB: loop body
LE: loop exit
PB: predicated region body
PF: predicated region fallthrough
CT: control target
= control target key end

     0   :  { %11 = vsyncpa [#allocation3], 0  ;;  %s1615_s0 = inlined_call_operand.hbm [shape: f32[8,16], index: 0, kind: input, shape index: {}]   ;;  %s1616_s1 = inlined_call_operand.hbm [shape: f32[16,128], index: 1, kind: input, shape index: {}]   ;;  %s1617_s2 = inlined_call_operand.hbm [shape: f32[2,128,128], index: 2, kind: input, shape index: {}]   ;;  %s1618_s3 = inlined_call_operand.hbm [shape: f32[2,128,128], index: 3, kind: input, shape index: {}]   ;;  %s1619_s4 = inlined_call_operand.hbm [shape: f32[128,128], index: 4, kind: input, shape index: {}]   ;;  %s1620_s5 = inlined_call_operand.vmem [shape: f32[16,128], index: 5, kind: input, shape index: {}]   ;;  %s1621_s6 = inlined_call_operand.hbm [shape: f32[8,128], index: 6, kind: output, shape index: {}]  }
   0x1   :  { %12 = vsyncpa [#allocation6], 0 }
   0x2   :  { %13 = vsyncpa [#allocation9], 0 }
   0x3   :  { %14 = vsyncpa [#allocation4], 0  ;;  %s1352_s21 = smov [#allocation5]   ;;  %s1212_s25 = scalar_lea.hbm %s1616_s1, 256 }
   0x4   :  { %s30_s22 = sshll.u32 %s1352_s21, 4  ;;  %p1213_p0 = scmp.ne.s32.totalorder %s1616_s1, %s1212_s25  ;;  %s31_s22 = int_to_ptr.vmem [resolvable:$true] %s30_s22 }
   0x5   :  { %p1216_p1 = scmp.lt.u32.totalorder %s1212_s25, %s1616_s1 }
   0x7   :  { %p1218_p2 = pnand %p1216_p1, %p1213_p0 }
   0x9   :  { %1221 = shalt.err (!%p1218_p2)
}
   0xa   :  { %s1222_s30 = scalar_lea.vmem %s31_s22, 256  ;;  %p1227_p4 = scmp.lt.s32.totalorder %s31_s22, %s31_s22 }
   0xb   :  { %p1223_p3 = scmp.ne.s32.totalorder %s31_s22, %s1222_s30  ;;  %p1228_p5 = scmp.lt.s32.totalorder %s1222_s30, %s1222_s30 }
   0xd   :  { %p1229_p6 = por %p1228_p5, %p1227_p4 }
   0xf   :  { %p1230_p7 = pnand %p1229_p6, %p1223_p3 }
  0x11   :  { %1233 = shalt.err (!%p1230_p7)
}
  0x12   :  { %s1353_s7 = smov 128   ;;  %s1354_s8 = smov 8  }
  0x13   :  { %36 = dma.hbm_to_vmem [thread:$0]  %s1616_s1, 256, %s31_s22, [#allocation6], %s1353_s7, %s1353_s7, %s1354_s8  }
  0x14   :  { %s1355_s11 = smov [#allocation8]   ;;  %s1356_s13 = smov [#allocation2]  }
  0x15   :  { %s54_s12 = sshll.u32 %s1355_s11, 4  ;;  %s21_s14 = sshll.u32 %s1356_s13, 4  ;;  %s55_s12 = int_to_ptr.vmem [resolvable:$true] %s54_s12  ;;  %s22_s14 = int_to_ptr.vmem [resolvable:$true] %s21_s14 }
  0x16   :  { %s1234_s17 = scalar_lea.hbm %s1618_s3, 4096 }
  0x17   :  { %p1235_p8 = scmp.ne.s32.totalorder %s1618_s3, %s1234_s17  ;;  %p1238_p9 = scmp.lt.u32.totalorder %s1234_s17, %s1618_s3 }
  0x19   :  { %p1240_p10 = pnand %p1238_p9, %p1235_p8 }
  0x1b   :  { %1243 = shalt.err (!%p1240_p10)
}
  0x1c   :  { %s1244_s1 = scalar_lea.vmem %s55_s12, 4096  ;;  %p1249_p12 = scmp.lt.s32.totalorder %s55_s12, %s55_s12 }
  0x1d   :  { %p1245_p11 = scmp.ne.s32.totalorder %s55_s12, %s1244_s1  ;;  %p1250_p13 = scmp.lt.s32.totalorder %s1244_s1, %s1244_s1 }
  0x1f   :  { %p1251_p0 = por %p1250_p13, %p1249_p12 }
  0x21   :  { %p1252_p1 = pnand %p1251_p0, %p1245_p11 }
  0x23   :  { %1255 = shalt.err (!%p1252_p1)
}
  0x24   :  { %60 = dma.hbm_to_vmem [thread:$0]  %s1618_s3, 4096, %s55_s12, [#allocation9], %s1353_s7, %s1353_s7, %s1354_s8  }
  0x25   :  { %s1256_s26 = scalar_lea.hbm %s1615_s0, 128 }
  0x26   :  { %p1257_p2 = scmp.ne.s32.totalorder %s1615_s0, %s1256_s26  ;;  %p1260_p3 = scmp.lt.u32.totalorder %s1256_s26, %s1615_s0 }
  0x28   :  { %p1262_p4 = pnand %p1260_p3, %p1257_p2 }
  0x2a   :  { %1265 = shalt.err (!%p1262_p4)
}
  0x2b   :  { %s1266_s9 = scalar_lea.vmem %s22_s14, 128  ;;  %p1271_p6 = scmp.lt.s32.totalorder %s22_s14, %s22_s14 }
  0x2c   :  { %p1267_p5 = scmp.ne.s32.totalorder %s22_s14, %s1266_s9  ;;  %p1272_p7 = scmp.lt.s32.totalorder %s1266_s9, %s1266_s9 }
  0x2e   :  { %p1273_p8 = por %p1272_p7, %p1271_p6 }
  0x30   :  { %p1274_p9 = pnand %p1273_p8, %p1267_p5 }
  0x32   :  { %1277 = shalt.err (!%p1274_p9)
}
  0x33   :  { %24 = dma.hbm_to_vmem [thread:$0]  %s1615_s0, 128, %s22_s14, [#allocation3]  }
  0x34   :  { %s1357_s11 = smov [#allocation7]   ;;  %s1358_s13 = smov [#allocation10]  }
  0x35   :  { %s42_s12 = sshll.u32 %s1357_s11, 4  ;;  %s66_s15 = sshll.u32 %s1358_s13, 4  ;;  %s43_s12 = int_to_ptr.vmem [resolvable:$true] %s42_s12  ;;  %s67_s15 = int_to_ptr.vmem [resolvable:$true] %s66_s15 }
  0x36   :  { %s1278_s18 = scalar_lea.hbm %s1617_s2, 4096 }
  0x37   :  { %p1279_p10 = scmp.ne.s32.totalorder %s1617_s2, %s1278_s18  ;;  %p1282_p11 = scmp.lt.u32.totalorder %s1278_s18, %s1617_s2 }
  0x39   :  { %p1284_p12 = pnand %p1282_p11, %p1279_p10 }
  0x3b   :  { %1287 = shalt.err (!%p1284_p12)
}
  0x3c   :  { %s1288_s0 = scalar_lea.vmem %s43_s12, 4096  ;;  %p1293_p0 = scmp.lt.s32.totalorder %s43_s12, %s43_s12 }
  0x3d   :  { %p1289_p13 = scmp.ne.s32.totalorder %s43_s12, %s1288_s0  ;;  %p1294_p1 = scmp.lt.s32.totalorder %s1288_s0, %s1288_s0 }
  0x3f   :  { %p1295_p2 = por %p1294_p1, %p1293_p0 }
  0x41   :  { %p1296_p3 = pnand %p1295_p2, %p1289_p13 }
  0x43   :  { %1299 = shalt.err (!%p1296_p3)
}
  0x44   :  { %48 = dma.hbm_to_vmem [thread:$0]  %s1617_s2, 4096, %s43_s12, [#allocation6], %s1353_s7, %s1353_s7, %s1354_s8  }
  0x45   :  { %s1300_s25 = scalar_lea.hbm %s1619_s4, 2048 }
  0x46   :  { %p1301_p4 = scmp.ne.s32.totalorder %s1619_s4, %s1300_s25  ;;  %p1304_p5 = scmp.lt.u32.totalorder %s1300_s25, %s1619_s4 }
  0x48   :  { %p1306_p6 = pnand %p1304_p5, %p1301_p4 }
  0x4a   :  { %1309 = shalt.err (!%p1306_p6)
}
  0x4b   :  { %s1310_s30 = scalar_lea.vmem %s67_s15, 2048  ;;  %p1315_p8 = scmp.lt.s32.totalorder %s67_s15, %s67_s15 }
  0x4c   :  { %p1311_p7 = scmp.ne.s32.totalorder %s67_s15, %s1310_s30  ;;  %p1316_p9 = scmp.lt.s32.totalorder %s1310_s30, %s1310_s30 }
  0x4e   :  { %p1317_p10 = por %p1316_p9, %p1315_p8 }
  0x50   :  { %p1318_p11 = pnand %p1317_p10, %p1311_p7 }
  0x52   :  { %1321 = shalt.err (!%p1318_p11)
}
  0x53   :  { %72 = dma.hbm_to_vmem [thread:$0]  %s1619_s4, 2048, %s67_s15, [#allocation9], %s1353_s7, %s1353_s7, %s1354_s8  }
  0x54   :  { %1344 = dma.done.wait [#allocation3], 128  }
  0x55   :  { %1345 = vsyncadd [#allocation3], 4294967168 }
  0x56   :  { %1346 = dma.done.wait [#allocation6], 4352  }
  0x57   :  { %1347 = vsyncadd [#allocation6], 4294962944 }
  0x58   :  { %1348 = dma.done.wait [#allocation9], 6144  }
  0x59   :  { %1349 = vsyncadd [#allocation9], 4294961152  ;;  %v1359_v0 = vmov 0.0|0.0   ;;  %vm1360_vm0 = vmmov 0   ;;  %v1361_v1 = vmov 0.0   ;;  %v93_v2 = vld [vmem:[#allocation5] sm:$0xff]  ;;  %v95_v30 = vlaneseq }
  0x5a   :  { %1068 = vmatprep.subr.bf16.mxu0 %v1359_v0  ;;  %890 = vmatprep.mubr.msk.f32.mxu0 %vm1360_vm0, %v1361_v1  ;;  %v94_v3 = vld [vmem:[#allocation5 + $0x8] sm:$0xff]  ;;  %v92_v5 = vld [vmem:[#allocation2] sm:$0xff]  ;;  %vm99_vm1 = vcmask 130048   ;;  %v205_v6 = vld [vmem:[#allocation7] sm:$0xff] }
  0x5b   :  { %1071 = vmatprep.subr.bf16.mxu1 %v1359_v0  ;;  %925 = vmatprep.mubr.msk.f32.mxu1 %vm1360_vm0, %v1361_v1  ;;  %v1069_v4 = vpack.c.bf16 %v94_v3, %v93_v2  ;;  %v206_v7 = vld [vmem:[#allocation7 + $0x8] sm:$0xff]  ;;  %v207_v9 = vld [vmem:[#allocation7 + $0x10] sm:$0xff]  ;;  %v208_v10 = vld [vmem:[#allocation7 + $0x18] sm:$0xff]  ;;  %v1487_v31 = vshrl.u32 %v95_v30, 7 }
  0x5c   :  { %v1072_v8 = vpack.c.bf16 %v206_v7, %v205_v6  ;;  %v1075_v11 = vpack.c.bf16 %v208_v10, %v207_v9  ;;  %v209_v12 = vld [vmem:[#allocation7 + $0x20] sm:$0xff]  ;;  %v210_v13 = vld [vmem:[#allocation7 + $0x28] sm:$0xff]  ;;  %v211_v15 = vld [vmem:[#allocation7 + $0x30] sm:$0xff] }
  0x5d   :  { %1070 = vmatpush3.bf16.msra.mxu0 %v1069_v4  ;;  %v1078_v14 = vpack.c.bf16 %v210_v13, %v209_v12  ;;  %v212_v16 = vld [vmem:[#allocation7 + $0x38] sm:$0xff]  ;;  %v213_v18 = vld [vmem:[#allocation7 + $0x40] sm:$0xff]  ;;  %v214_v19 = vld [vmem:[#allocation7 + $0x48] sm:$0xff]  ;;  %v97_v32 = vsub.s32 0, %v1487_v31  ;;  %v196_v56 = vsub.s32 1, %v1487_v31  ;;  %v201_v57 = vsub.s32 2, %v1487_v31 }
  0x5e   :  { %1095 = vmatprep.subr.bf16.mxu0 %v1359_v0  ;;  %1073 = vmatpush3.bf16.msra.mxu1 %v1072_v8  ;;  %v1081_v17 = vpack.c.bf16 %v212_v16, %v211_v15  ;;  %v1084_v20 = vpack.c.bf16 %v214_v19, %v213_v18  ;;  %v215_v21 = vld [vmem:[#allocation7 + $0x50] sm:$0xff]  ;;  %v216_v22 = vld [vmem:[#allocation7 + $0x58] sm:$0xff]  ;;  %v217_v24 = vld [vmem:[#allocation7 + $0x60] sm:$0xff] }
  0x5f   :  { %1074 = vmatprep.subr.bf16.mxu1 %v1359_v0  ;;  %v1087_v23 = vpack.c.bf16 %v216_v22, %v215_v21  ;;  %v218_v25 = vld [vmem:[#allocation7 + $0x68] sm:$0xff]  ;;  %v219_v27 = vld [vmem:[#allocation7 + $0x70] sm:$0xff]  ;;  %v220_v28 = vld [vmem:[#allocation7 + $0x78] sm:$0xff] }
  0x60   :  { %891 = vmatmul.mubr.msk.f32.vlgmr.msra.gmra.mrb[0].mxu0 %vm99_vm1, %v92_v5  ;;  %v1090_v26 = vpack.c.bf16 %v218_v25, %v217_v24  ;;  %v1093_v29 = vpack.c.bf16 %v220_v28, %v219_v27  ;;  %v1493_v33 = vld [vmem:[%s1620_s5] sm:$0xff]  ;;  %v325_v3 = vld [vmem:[#allocation8] sm:$0xff]  ;;  %v326_v4 = vld [vmem:[#allocation8 + $0x8] sm:$0xff]  ;;  %v223_v27 = vsub.s32 3, %v1487_v31 }
  0x61   :  { %960 = vmatprep.mubr.msk.f32.mxu0 %vm1360_vm0, %v1361_v1  ;;  %v98_v34 = vrot.slane %v1493_v33, %v97_v32  ;;  %v197_v58 = vrot.slane %v1493_v33, %v196_v56  ;;  %v202_v61 = vrot.slane %v1493_v33, %v201_v57  ;;  %v1096_v5 = vpack.c.bf16 %v326_v4, %v325_v3  ;;  %v327_v6 = vld [vmem:[#allocation8 + $0x10] sm:$0xff]  ;;  %v328_v7 = vld [vmem:[#allocation8 + $0x18] sm:$0xff]  ;;  %v329_v9 = vld [vmem:[#allocation8 + $0x20] sm:$0xff] }
  0x62   :  { %1076 = vmatpush3.bf16.msra.mxu1 %v1075_v11  ;;  %v1099_v8 = vpack.c.bf16 %v328_v7, %v327_v6  ;;  %v330_v10 = vld [vmem:[#allocation8 + $0x28] sm:$0xff]  ;;  %v331_v12 = vld [vmem:[#allocation8 + $0x30] sm:$0xff]  ;;  %v332_v13 = vld [vmem:[#allocation8 + $0x38] sm:$0xff]  ;;  %v224_v28 = vrot.slane %v1493_v33, %v223_v27 }
  0x63   :  { %1077 = vmatprep.subr.bf16.mxu1 %v1359_v0  ;;  %1097 = vmatpush3.bf16.msra.mxu0 %v1096_v5  ;;  %v1102_v11 = vpack.c.bf16 %v330_v10, %v329_v9  ;;  %v333_v15 = vld [vmem:[#allocation8 + $0x40] sm:$0xff]  ;;  %v334_v16 = vld [vmem:[#allocation8 + $0x48] sm:$0xff]  ;;  %v335_v18 = vld [vmem:[#allocation8 + $0x50] sm:$0xff] }
  0x64   :  { %1098 = vmatprep.subr.bf16.mxu0 %v1359_v0  ;;  %v336_v19 = vld [vmem:[#allocation8 + $0x58] sm:$0xff]  ;;  %v337_v21 = vld [vmem:[#allocation8 + $0x60] sm:$0xff]  ;;  %v338_v22 = vld [vmem:[#allocation8 + $0x68] sm:$0xff] }
  0x65   :  { %v339_v24 = vld [vmem:[#allocation8 + $0x70] sm:$0xff]  ;;  %v340_v25 = vld [vmem:[#allocation8 + $0x78] sm:$0xff]  ;;  %v448_v3 = vld [vmem:[#allocation7 + $0x88] sm:$0xff] }
  0x66   :  { %1079 = vmatpush3.bf16.msra.mxu1 %v1078_v14  ;;  %v1105_v14 = vpack.c.bf16 %v332_v13, %v331_v12  ;;  %v449_v5 = vld [vmem:[#allocation7 + $0x90] sm:$0xff]  ;;  %v450_v6 = vld [vmem:[#allocation7 + $0x98] sm:$0xff]  ;;  %v452_v9 = vld [vmem:[#allocation7 + $0xa8] sm:$0xff] }
  0x67   :  { %1080 = vmatprep.subr.bf16.mxu1 %v1359_v0  ;;  %1100 = vmatpush3.bf16.msra.mxu0 %v1099_v8  ;;  %v1123_v7 = vpack.c.bf16 %v450_v6, %v449_v5  ;;  %v451_v8 = vld [vmem:[#allocation7 + $0xa0] sm:$0xff]  ;;  %v454_v12 = vld [vmem:[#allocation7 + $0xb8] sm:$0xff]  ;;  %v569_v5 = vld [vmem:[#allocation8 + $0x88] sm:$0xff] }
  0x68   :  { %1101 = vmatprep.subr.bf16.mxu0 %v1359_v0  ;;  %v1126_v10 = vpack.c.bf16 %v452_v9, %v451_v8  ;;  %v573_v9 = vld [vmem:[#allocation8 + $0xa8] sm:$0xff] }
  0x6a   :  { %1082 = vmatpush3.bf16.msra.mxu1 %v1081_v17  ;;  %v1108_v17 = vpack.c.bf16 %v334_v16, %v333_v15  ;;  %v456_v15 = vld [vmem:[#allocation7 + $0xc8] sm:$0xff] }
  0x6b   :  { %1083 = vmatprep.subr.bf16.mxu1 %v1359_v0  ;;  %1103 = vmatpush3.bf16.msra.mxu0 %v1102_v11  ;;  %v453_v11 = vld [vmem:[#allocation7 + $0xb0] sm:$0xff] }
  0x6c   :  { %1104 = vmatprep.subr.bf16.mxu0 %v1359_v0  ;;  %v1129_v13 = vpack.c.bf16 %v454_v12, %v453_v11  ;;  %v574_v11 = vld [vmem:[#allocation8 + $0xb0] sm:$0xff] }
  0x6e   :  { %1085 = vmatpush3.bf16.msra.mxu1 %v1084_v20  ;;  %v1111_v20 = vpack.c.bf16 %v336_v19, %v335_v18  ;;  %v458_v18 = vld [vmem:[#allocation7 + $0xd8] sm:$0xff] }
  0x6f   :  { %1086 = vmatprep.subr.bf16.mxu1 %v1359_v0  ;;  %1106 = vmatpush3.bf16.msra.mxu0 %v1105_v14  ;;  %v455_v14 = vld [vmem:[#allocation7 + $0xc0] sm:$0xff] }
  0x70   :  { %1107 = vmatprep.subr.bf16.mxu0 %v1359_v0  ;;  %v1132_v16 = vpack.c.bf16 %v456_v15, %v455_v14  ;;  %v577_v14 = vld [vmem:[#allocation8 + $0xc8] sm:$0xff] }
  0x72   :  { %1088 = vmatpush3.bf16.msra.mxu1 %v1087_v23  ;;  %v1114_v23 = vpack.c.bf16 %v338_v22, %v337_v21  ;;  %v460_v21 = vld [vmem:[#allocation7 + $0xe8] sm:$0xff] }
  0x73   :  { %1089 = vmatprep.subr.bf16.mxu1 %v1359_v0  ;;  %1109 = vmatpush3.bf16.msra.mxu0 %v1108_v17  ;;  %v457_v17 = vld [vmem:[#allocation7 + $0xd0] sm:$0xff] }
  0x74   :  { %1110 = vmatprep.subr.bf16.mxu0 %v1359_v0  ;;  %v1135_v19 = vpack.c.bf16 %v458_v18, %v457_v17  ;;  %v579_v17 = vld [vmem:[#allocation8 + $0xd8] sm:$0xff] }
  0x76   :  { %1091 = vmatpush3.bf16.msra.mxu1 %v1090_v26  ;;  %v1117_v26 = vpack.c.bf16 %v340_v25, %v339_v24  ;;  %v462_v24 = vld [vmem:[#allocation7 + $0xf8] sm:$0xff] }
  0x77   :  { %1092 = vmatprep.subr.bf16.mxu1 %v1359_v0  ;;  %1112 = vmatpush3.bf16.msra.mxu0 %v1111_v20  ;;  %v459_v20 = vld [vmem:[#allocation7 + $0xe0] sm:$0xff] }
  0x78   :  { %1113 = vmatprep.subr.bf16.mxu0 %v1359_v0  ;;  %v1138_v22 = vpack.c.bf16 %v460_v21, %v459_v20  ;;  %v581_v20 = vld [vmem:[#allocation8 + $0xe8] sm:$0xff] }
  0x7a   :  { %1094 = vmatpush3.bf16.msra.mxu1 %v1093_v29 }
  0x7b   :  { %1119 = vmatprep.subr.bf16.mxu1 %v1359_v0  ;;  %1115 = vmatpush3.bf16.msra.mxu0 %v1114_v23  ;;  %v461_v23 = vld [vmem:[#allocation7 + $0xf0] sm:$0xff] }
  0x7c   :  { %1116 = vmatprep.subr.bf16.mxu0 %v1359_v0  ;;  %v1141_v25 = vpack.c.bf16 %v462_v24, %v461_v23  ;;  %v583_v23 = vld [vmem:[#allocation8 + $0xf8] sm:$0xff] }
  0x7f   :  { %1118 = vmatpush3.bf16.msra.mxu0 %v1117_v26  ;;  %v343_v26 = vsub.s32 6, %v1487_v31 }
  0x80   :  { %1143 = vmatprep.subr.bf16.mxu0 %v1359_v0 }
 0x133   :  { %v169_v35 = vpop.f32.mrb[0].mxu0 }
 0x134   :  { %v170_v36 = vadd.f32 %v169_v35, %v98_v34  ;;  %v892_v37 = vpop.f32.mrb[1].mxu0 }
 0x136   :  { %v1498_v38 = vmax.f32 %v170_v36, 0.0 }
 0x138   :  { %v174_v39 = vrot.slane %v1498_v38, 4 }
 0x13a   :  { %v175_v40 = vadd.f32 %v174_v39, %v1498_v38 }
 0x13c   :  { %v176_v41 = vrot.slane %v175_v40, 2 }
 0x13e   :  { %v177_v42 = vadd.f32 %v176_v41, %v175_v40 }
 0x140   :  { %v178_v43 = vrot.slane %v177_v42, 1 }
 0x142   :  { %v179_v44 = vadd.f32 %v178_v43, %v177_v42 }
 0x144   :  { %v181_v45 = vmul.f32 0.125, %v179_v44 }
 0x146   :  { %v182_v46 = vsub.f32 %v1498_v38, %v181_v45 }
 0x148   :  { %v183_v47 = vmul.f32 %v182_v46, %v182_v46 }
 0x14a   :  { %v184_v48 = vrot.slane %v183_v47, 4 }
 0x14c   :  { %v185_v49 = vadd.f32 %v184_v48, %v183_v47 }
 0x14e   :  { %v186_v50 = vrot.slane %v185_v49, 2 }
 0x150   :  { %v187_v51 = vadd.f32 %v186_v50, %v185_v49 }
 0x152   :  { %v188_v52 = vrot.slane %v187_v51, 1 }
 0x154   :  { %v189_v53 = vadd.f32 %v188_v52, %v187_v51 }
 0x156   :  { %v190_v54 = vmul.f32 0.125, %v189_v53  ;;  %v316_v53 = vsub.s32 4, %v1487_v31 }
 0x158   :  { %v191_v55 = vadd.f32 1e-05, %v190_v54  ;;  %v321_v54 = vsub.s32 5, %v1487_v31 }
 0x15a   :  { %1202 = vrsqrt.f32 %v191_v55  ;;  %v317_v55 = vrot.slane %v1493_v33, %v316_v53 }
 0x164   :  { %v1203_v59 = vpop.eup %1202 }
 0x165   :  { %v193_v60 = vmul.f32 %v1203_v59, %v182_v46 }
 0x167   :  { %v198_v62 = vmul.f32 %v197_v58, %v193_v60  ;;  %v322_v60 = vrot.slane %v1493_v33, %v321_v54 }
 0x169   :  { %v203_v63 = vadd.f32 %v202_v61, %v198_v62 }
 0x16b   :  { %v204_v2 = vmax.f32 %v203_v63, 0.0 }
 0x16d   :  { %926 = vmatmul.mubr.f32.vlgmr.msra.gmra.mrb[0].mxu1 %v204_v2  ;;  %v447_v2 = vld [vmem:[#allocation7 + $0x80] sm:$0xff] }
 0x16e   :  { %995 = vmatprep.mubr.msk.f32.mxu1 %vm1360_vm0, %v1361_v1  ;;  %v1120_v4 = vpack.c.bf16 %v448_v3, %v447_v2 }
 0x170   :  { %1121 = vmatpush3.bf16.msra.mxu1 %v1120_v4  ;;  %v568_v4 = vld [vmem:[#allocation8 + $0x80] sm:$0xff] }
 0x171   :  { %1122 = vmatprep.subr.bf16.mxu1 %v1359_v0  ;;  %v1144_v6 = vpack.c.bf16 %v569_v5, %v568_v4  ;;  %v691_v5 = vld [vmem:[#allocation10 + $0x10] sm:$0xff] }
 0x174   :  { %1124 = vmatpush3.bf16.msra.mxu1 %v1123_v7  ;;  %v571_v7 = vld [vmem:[#allocation8 + $0x98] sm:$0xff] }
 0x175   :  { %1125 = vmatprep.subr.bf16.mxu1 %v1359_v0 }
 0x178   :  { %1127 = vmatpush3.bf16.msra.mxu1 %v1126_v10 }
 0x179   :  { %1128 = vmatprep.subr.bf16.mxu1 %v1359_v0 }
 0x17c   :  { %1130 = vmatpush3.bf16.msra.mxu1 %v1129_v13  ;;  %v576_v13 = vld [vmem:[#allocation8 + $0xc0] sm:$0xff] }
 0x17d   :  { %1131 = vmatprep.subr.bf16.mxu1 %v1359_v0  ;;  %v1156_v15 = vpack.c.bf16 %v577_v14, %v576_v13  ;;  %v700_v13 = vld [vmem:[#allocation10 + $0x58] sm:$0xff] }
 0x180   :  { %1133 = vmatpush3.bf16.msra.mxu1 %v1132_v16  ;;  %v578_v16 = vld [vmem:[#allocation8 + $0xd0] sm:$0xff] }
 0x181   :  { %1134 = vmatprep.subr.bf16.mxu1 %v1359_v0  ;;  %v1159_v18 = vpack.c.bf16 %v579_v17, %v578_v16  ;;  %v702_v16 = vld [vmem:[#allocation10 + $0x68] sm:$0xff] }
 0x184   :  { %1136 = vmatpush3.bf16.msra.mxu1 %v1135_v19  ;;  %v580_v19 = vld [vmem:[#allocation8 + $0xe0] sm:$0xff] }
 0x185   :  { %1137 = vmatprep.subr.bf16.mxu1 %v1359_v0  ;;  %v1162_v21 = vpack.c.bf16 %v581_v20, %v580_v19  ;;  %v704_v19 = vld [vmem:[#allocation10 + $0x78] sm:$0xff] }
 0x188   :  { %1139 = vmatpush3.bf16.msra.mxu1 %v1138_v22  ;;  %v582_v22 = vld [vmem:[#allocation8 + $0xf0] sm:$0xff] }
 0x189   :  { %1140 = vmatprep.subr.bf16.mxu1 %v1359_v0  ;;  %v1165_v24 = vpack.c.bf16 %v583_v23, %v582_v22 }
 0x18c   :  { %1142 = vmatpush3.bf16.msra.mxu1 %v1141_v25 }
 0x18d   :  { %1167 = vmatprep.subr.bf16.mxu1 %v1359_v0 }
 0x240   :  { %v291_v29 = vpop.f32.mrb[0].mxu1 }
 0x241   :  { %v292_v30 = vadd.f32 %v291_v29, %v224_v28  ;;  %v927_v34 = vpop.f32.mrb[1].mxu1  ;;  %v344_v28 = vrot.slane %v1493_v33, %v343_v26 }
 0x243   :  { %v295_v35 = vrot.slane %v292_v30, 4 }
 0x245   :  { %v296_v36 = vadd.f32 %v295_v35, %v292_v30 }
 0x247   :  { %v297_v37 = vrot.slane %v296_v36, 2 }
 0x249   :  { %v298_v39 = vadd.f32 %v297_v37, %v296_v36 }
 0x24b   :  { %v299_v40 = vrot.slane %v298_v39, 1 }
 0x24d   :  { %v300_v41 = vadd.f32 %v299_v40, %v298_v39 }
 0x24f   :  { %v301_v42 = vmul.f32 0.125, %v300_v41 }
 0x251   :  { %v302_v43 = vsub.f32 %v292_v30, %v301_v42 }
 0x253   :  { %v303_v44 = vmul.f32 %v302_v43, %v302_v43 }
 0x255   :  { %v304_v45 = vrot.slane %v303_v44, 4 }
 0x257   :  { %v305_v46 = vadd.f32 %v304_v45, %v303_v44 }
 0x259   :  { %v306_v47 = vrot.slane %v305_v46, 2 }
 0x25b   :  { %v307_v48 = vadd.f32 %v306_v47, %v305_v46 }
 0x25d   :  { %v308_v49 = vrot.slane %v307_v48, 1 }
 0x25f   :  { %v309_v50 = vadd.f32 %v308_v49, %v307_v48 }
 0x261   :  { %v310_v51 = vmul.f32 0.125, %v309_v50 }
 0x263   :  { %v311_v52 = vadd.f32 1e-05, %v310_v51 }
 0x265   :  { %1204 = vrsqrt.f32 %v311_v52 }
 0x26f   :  { %v1205_v58 = vpop.eup %1204 }
 0x270   :  { %v313_v59 = vmul.f32 %v1205_v58, %v302_v43  ;;  %v1557_v58 = vld [vmem:[%s1620_s5 + $0x8] sm:$0xff]  ;;  %s1362_s5 = smov [#allocation11]  }
 0x271   :  { %v466_v25 = vrot.slane %v1557_v58, %v196_v56  ;;  %s786_s10 = sshll.u32 %s1362_s5, 4  ;;  %s787_s10 = int_to_ptr.vmem [resolvable:$true] %s786_s10 }
 0x272   :  { %v318_v61 = vmul.f32 %v317_v55, %v313_v59  ;;  %v437_v55 = vsub.s32 7, %v1487_v31  ;;  %s1322_s11 = scalar_lea.vmem %s787_s10, 128  ;;  %p1327_p13 = scmp.lt.s32.totalorder %s787_s10, %s787_s10 }
 0x273   :  { %p1323_p12 = scmp.ne.s32.totalorder %s787_s10, %s1322_s11  ;;  %p1328_p0 = scmp.lt.s32.totalorder %s1322_s11, %s1322_s11 }
 0x274   :  { %v323_v62 = vadd.f32 %v322_v60, %v318_v61  ;;  %v438_v59 = vrot.slane %v1493_v33, %v437_v55  ;;  %v443_v61 = vrot.slane %v1557_v58, %v97_v32  ;;  %v570_v33 = vld [vmem:[#allocation8 + $0x90] sm:$0xff]  ;;  %v572_v32 = vld [vmem:[#allocation8 + $0xa0] sm:$0xff] }
 0x275   :  { %v1147_v8 = vpack.c.bf16 %v571_v7, %v570_v33  ;;  %v1150_v10 = vpack.c.bf16 %v573_v9, %v572_v32  ;;  %v694_v7 = vld [vmem:[#allocation10 + $0x28] sm:$0xff]  ;;  %v696_v32 = vld [vmem:[#allocation10 + $0x38] sm:$0xff]  ;;  %p1329_p1 = por %p1328_p0, %p1327_p13 }
 0x276   :  { %v324_v63 = vmax.f32 %v323_v62, 0.0 }
 0x277   :  { %p1330_p2 = pnand %p1329_p1, %p1323_p12 }
 0x278   :  { %961 = vmatmul.mubr.f32.vlgmr.msra.gmra.mrb[2].mxu0 %v324_v63 }
 0x279   :  { %1030 = vmatprep.mubr.msk.f32.mxu0 %vm1360_vm0, %v1361_v1  ;;  %1145 = vmatpush3.bf16.msra.mxu0 %v1144_v6  ;;  %v692_v6 = vld [vmem:[#allocation10 + $0x18] sm:$0xff] }
 0x27a   :  { %1146 = vmatprep.subr.bf16.mxu0 %v1359_v0  ;;  %v1171_v33 = vpack.c.bf16 %v692_v6, %v691_v5 }
 0x27d   :  { %1148 = vmatpush3.bf16.msra.mxu0 %v1147_v8  ;;  %v695_v8 = vld [vmem:[#allocation10 + $0x30] sm:$0xff] }
 0x27e   :  { %1149 = vmatprep.subr.bf16.mxu0 %v1359_v0  ;;  %v1177_v9 = vpack.c.bf16 %v696_v32, %v695_v8 }
 0x281   :  { %1151 = vmatpush3.bf16.msra.mxu0 %v1150_v10  ;;  %v697_v10 = vld [vmem:[#allocation10 + $0x40] sm:$0xff] }
 0x282   :  { %1152 = vmatprep.subr.bf16.mxu0 %v1359_v0 }
 0x34b   :  { %v411_v29 = vpop.f32.mrb[2].mxu0 }
 0x34c   :  { %v412_v30 = vadd.f32 %v411_v29, %v344_v28  ;;  %v962_v34 = vpop.f32.mrb[3].mxu0 }
 0x34e   :  { %v1548_v35 = vadd.f32 %v412_v30, %v1498_v38 }
 0x350   :  { %v416_v36 = vrot.slane %v1548_v35, 4 }
 0x352   :  { %v417_v37 = vadd.f32 %v416_v36, %v1548_v35 }
 0x354   :  { %v418_v39 = vrot.slane %v417_v37, 2 }
 0x356   :  { %v419_v40 = vadd.f32 %v418_v39, %v417_v37 }
 0x358   :  { %v420_v41 = vrot.slane %v419_v40, 1 }
 0x35a   :  { %v421_v42 = vadd.f32 %v420_v41, %v419_v40 }
 0x35c   :  { %v422_v43 = vmul.f32 0.125, %v421_v42 }
 0x35e   :  { %v423_v44 = vsub.f32 %v1548_v35, %v422_v43 }
 0x360   :  { %v424_v45 = vmul.f32 %v423_v44, %v423_v44 }
 0x362   :  { %v425_v46 = vrot.slane %v424_v45, 4 }
 0x364   :  { %v426_v47 = vadd.f32 %v425_v46, %v424_v45 }
 0x366   :  { %v427_v48 = vrot.slane %v426_v47, 2 }
 0x368   :  { %v428_v49 = vadd.f32 %v427_v48, %v426_v47 }
 0x36a   :  { %v429_v50 = vrot.slane %v428_v49, 1 }
 0x36c   :  { %v430_v51 = vadd.f32 %v429_v50, %v428_v49 }
 0x36e   :  { %v431_v38 = vmul.f32 0.125, %v430_v51 }
 0x370   :  { %v432_v52 = vadd.f32 1e-05, %v431_v38  ;;  %v559_v38 = vrot.slane %v1557_v58, %v201_v57  ;;  %v693_v57 = vld [vmem:[#allocation10 + $0x20] sm:$0xff] }
 0x372   :  { %1206 = vrsqrt.f32 %v432_v52 }
 0x37c   :  { %v1207_v60 = vpop.eup %1206 }
 0x37d   :  { %v434_v62 = vmul.f32 %v1207_v60, %v423_v44 }
 0x37f   :  { %v439_v63 = vmul.f32 %v438_v59, %v434_v62  ;;  %v564_v59 = vrot.slane %v1557_v58, %v223_v27  ;;  %v1174_v27 = vpack.c.bf16 %v694_v7, %v693_v57 }
 0x381   :  { %v444_v2 = vadd.f32 %v443_v61, %v439_v63 }
 0x383   :  { %v445_v3 = vmax.f32 %v444_v2, 0.0  ;;  %v689_v2 = vld [vmem:[#allocation10] sm:$0xff] }
 0x385   :  { %996 = vmatmul.mubr.f32.vlgmr.msra.gmra.mrb[2].mxu1 %v445_v3  ;;  %v690_v3 = vld [vmem:[#allocation10 + $0x8] sm:$0xff] }
 0x386   :  { %1065 = vmatprep.mubr.msk.f32.mxu1 %vm1360_vm0, %v1361_v1  ;;  %v575_v1 = vld [vmem:[#allocation8 + $0xb8] sm:$0xff]  ;;  %v1168_v4 = vpack.c.bf16 %v690_v3, %v689_v2 }
 0x387   :  { %v1153_v12 = vpack.c.bf16 %v575_v1, %v574_v11  ;;  %v698_v11 = vld [vmem:[#allocation10 + $0x48] sm:$0xff] }
 0x388   :  { %1169 = vmatpush3.bf16.msra.mxu1 %v1168_v4  ;;  %v1180_v1 = vpack.c.bf16 %v698_v11, %v697_v10 }
 0x389   :  { %1154 = vmatpush3.bf16.msra.mxu0 %v1153_v12  ;;  %1170 = vmatprep.subr.bf16.mxu1 %v1359_v0  ;;  %v699_v12 = vld [vmem:[#allocation10 + $0x50] sm:$0xff] }
 0x38a   :  { %1155 = vmatprep.subr.bf16.mxu0 %v1359_v0  ;;  %v1183_v14 = vpack.c.bf16 %v700_v13, %v699_v12 }
 0x38c   :  { %1172 = vmatpush3.bf16.msra.mxu1 %v1171_v33 }
 0x38d   :  { %1157 = vmatpush3.bf16.msra.mxu0 %v1156_v15  ;;  %1173 = vmatprep.subr.bf16.mxu1 %v1359_v0  ;;  %v701_v15 = vld [vmem:[#allocation10 + $0x60] sm:$0xff] }
 0x38e   :  { %1158 = vmatprep.subr.bf16.mxu0 %v1359_v0  ;;  %v1186_v17 = vpack.c.bf16 %v702_v16, %v701_v15 }
 0x390   :  { %1175 = vmatpush3.bf16.msra.mxu1 %v1174_v27 }
 0x391   :  { %1160 = vmatpush3.bf16.msra.mxu0 %v1159_v18  ;;  %1176 = vmatprep.subr.bf16.mxu1 %v1359_v0  ;;  %v703_v18 = vld [vmem:[#allocation10 + $0x70] sm:$0xff] }
 0x392   :  { %1161 = vmatprep.subr.bf16.mxu0 %v1359_v0  ;;  %v1189_v20 = vpack.c.bf16 %v704_v19, %v703_v18 }
 0x394   :  { %1178 = vmatpush3.bf16.msra.mxu1 %v1177_v9 }
 0x395   :  { %1163 = vmatpush3.bf16.msra.mxu0 %v1162_v21  ;;  %1179 = vmatprep.subr.bf16.mxu1 %v1359_v0  ;;  %v587_v21 = vrot.slane %v1557_v58, %v316_v53 }
 0x396   :  { %1164 = vmatprep.subr.bf16.mxu0 %v1359_v0 }
 0x398   :  { %1181 = vmatpush3.bf16.msra.mxu1 %v1180_v1 }
 0x399   :  { %1166 = vmatpush3.bf16.msra.mxu0 %v1165_v24  ;;  %1182 = vmatprep.subr.bf16.mxu1 %v1359_v0 }
 0x39c   :  { %1184 = vmatpush3.bf16.msra.mxu1 %v1183_v14 }
 0x39d   :  { %1185 = vmatprep.subr.bf16.mxu1 %v1359_v0 }
 0x3a0   :  { %1187 = vmatpush3.bf16.msra.mxu1 %v1186_v17 }
 0x3a1   :  { %1188 = vmatprep.subr.bf16.mxu1 %v1359_v0 }
 0x3a4   :  { %1190 = vmatpush3.bf16.msra.mxu1 %v1189_v20 }
 0x458   :  { %v533_v28 = vpop.f32.mrb[2].mxu1 }
 0x459   :  { %v534_v29 = vadd.f32 %v533_v28, %v466_v25  ;;  %v997_v30 = vpop.f32.mrb[3].mxu1 }
 0x45b   :  { %v537_v34 = vrot.slane %v534_v29, 4 }
 0x45d   :  { %v538_v36 = vadd.f32 %v537_v34, %v534_v29 }
 0x45f   :  { %v539_v37 = vrot.slane %v538_v36, 2 }
 0x461   :  { %v540_v39 = vadd.f32 %v539_v37, %v538_v36 }
 0x463   :  { %v541_v40 = vrot.slane %v540_v39, 1 }
 0x465   :  { %v542_v41 = vadd.f32 %v541_v40, %v540_v39 }
 0x467   :  { %v543_v42 = vmul.f32 0.125, %v542_v41 }
 0x469   :  { %v544_v43 = vsub.f32 %v534_v29, %v543_v42 }
 0x46b   :  { %v545_v44 = vmul.f32 %v544_v43, %v544_v43 }
 0x46d   :  { %v546_v45 = vrot.slane %v545_v44, 4 }
 0x46f   :  { %v547_v46 = vadd.f32 %v546_v45, %v545_v44 }
 0x471   :  { %v548_v47 = vrot.slane %v547_v46, 2 }
 0x473   :  { %v549_v48 = vadd.f32 %v548_v47, %v547_v46 }
 0x475   :  { %v550_v49 = vrot.slane %v549_v48, 1 }
 0x477   :  { %v551_v50 = vadd.f32 %v550_v49, %v549_v48  ;;  %v686_v49 = vrot.slane %v1557_v58, %v343_v26 }
 0x479   :  { %v552_v51 = vmul.f32 0.125, %v551_v50 }
 0x47b   :  { %v553_v56 = vadd.f32 1e-05, %v552_v51 }
 0x47d   :  { %1208 = vrsqrt.f32 %v553_v56 }
 0x487   :  { %v1209_v52 = vpop.eup %1208 }
 0x488   :  { %v555_v60 = vmul.f32 %v1209_v52, %v544_v43  ;;  %v708_v52 = vrot.slane %v1557_v58, %v437_v55 }
 0x48a   :  { %v560_v61 = vmul.f32 %v559_v38, %v555_v60 }
 0x48c   :  { %v565_v62 = vadd.f32 %v564_v59, %v560_v61 }
 0x48e   :  { %v566_v63 = vmax.f32 %v565_v62, 0.0 }
 0x490   :  { %1031 = vmatmul.mubr.f32.vlgmr.msra.gmra.mrb[4].mxu0 %v566_v63 }
 0x563   :  { %v654_v22 = vpop.f32.mrb[4].mxu0 }
 0x564   :  { %v655_v23 = vadd.f32 %v654_v22, %v587_v21  ;;  %v1032_v24 = vpop.f32.mrb[5].mxu0 }
 0x566   :  { %v658_v25 = vadd.f32 %v655_v23, %v1548_v35  ;;  %v681_v35 = vrot.slane %v1557_v58, %v321_v54 }
 0x568   :  { %v659_v28 = vrot.slane %v658_v25, 4 }
 0x56a   :  { %v660_v29 = vadd.f32 %v659_v28, %v658_v25 }
 0x56c   :  { %v661_v30 = vrot.slane %v660_v29, 2 }
 0x56e   :  { %v662_v34 = vadd.f32 %v661_v30, %v660_v29 }
 0x570   :  { %v663_v36 = vrot.slane %v662_v34, 1 }
 0x572   :  { %v664_v37 = vadd.f32 %v663_v36, %v662_v34 }
 0x574   :  { %v665_v39 = vmul.f32 0.125, %v664_v37 }
 0x576   :  { %v666_v40 = vsub.f32 %v658_v25, %v665_v39 }
 0x578   :  { %v667_v41 = vmul.f32 %v666_v40, %v666_v40 }
 0x57a   :  { %v668_v0 = vrot.slane %v667_v41, 4 }
 0x57c   :  { %v669_v42 = vadd.f32 %v668_v0, %v667_v41 }
 0x57e   :  { %v670_v43 = vrot.slane %v669_v42, 2 }
 0x580   :  { %v671_v44 = vadd.f32 %v670_v43, %v669_v42 }
 0x582   :  { %v672_v45 = vrot.slane %v671_v44, 1 }
 0x584   :  { %v673_v53 = vadd.f32 %v672_v45, %v671_v44 }
 0x586   :  { %v674_v46 = vmul.f32 0.125, %v673_v53 }
 0x588   :  { %v675_v47 = vadd.f32 1e-05, %v674_v46 }
 0x58a   :  { %1210 = vrsqrt.f32 %v675_v47 }
 0x594   :  { %v1211_v48 = vpop.eup %1210 }
 0x595   :  { %v677_v50 = vmul.f32 %v1211_v48, %v666_v40 }
 0x597   :  { %v682_v51 = vmul.f32 %v681_v35, %v677_v50 }
 0x599   :  { %v687_v56 = vadd.f32 %v686_v49, %v682_v51 }
 0x59b   :  { %v688_v38 = vmax.f32 %v687_v56, 0.0 }
 0x59d   :  { %1066 = vmatmul.mubr.f32.vlgmr.msra.gmra.mrb[4].mxu1 %v688_v38 }
 0x670   :  { %v775_v59 = vpop.f32.mrb[4].mxu1 }
 0x671   :  { %v776_v60 = vadd.f32 %v775_v59, %v708_v52  ;;  %v1067_v61 = vpop.f32.mrb[5].mxu1 }
 0x673   :  { %779 = vst [vmem:[#allocation11] sm:$0xff] %v776_v60 }
 0x674   :  { %1333 = shalt.err (!%p1330_p2)
}
 0x675   :  { %s1334_s15 = scalar_lea.hbm %s1621_s6, 128 }
 0x676   :  { %p1335_p3 = scmp.ne.s32.totalorder %s1621_s6, %s1334_s15  ;;  %p1338_p4 = scmp.lt.u32.totalorder %s1334_s15, %s1621_s6 }
 0x678   :  { %p1340_p5 = pnand %p1338_p4, %p1335_p3 }
 0x67a   :  { %1343 = shalt.err (!%p1340_p5)
}
 0x67b   :  { %789 = dma.vmem_to_hbm [thread:$0]  %s787_s10, 128, %s1621_s6, [#allocation4]  }
 0x67c   :  { %1350 = dma.done.wait [#allocation4], 128  }
 0x67d   :  { %1351 = vsyncadd [#allocation4], 4294967168 }
 0x67e   :  { %793 = vsyncpa [#allocation3], 1 }
 0x67f   :  { %794 = vsyncpa [#allocation6], 1 }
 0x680   :  { %795 = vsyncpa [#allocation9], 1 }
 0x681   :  { %796 = vsyncpa [#allocation4], 1 }

</bundles_post_ra>
